<compile_context>
chip_gen: v7x
topology: tpu7x:2x2x1
jax: 0.10.0
libtpu: 0.0.40
codegen_flags: <defaults>
</compile_context>

<pallas_src>
import jax
import jax.numpy as jnp
from jax import lax
from jax.experimental import pallas as pl
from jax.experimental.pallas import tpu as pltpu


def _regression_head_kernel(idx_ref, feat_ref, wd_ref, bd_ref, wo_ref, bo_ref,
                            out_ref, acc_ref):
    """One (batch-tile, seq-tile) grid step.

    idx_ref  : VMEM int32 (TB, 2)     per-row [start, end)
    feat_ref : VMEM       (TB, TS, H) features tile (f32 or bf16)
    wd_ref   : VMEM f32   (H, H)      dense weight, stored (in, out)
    bd_ref   : VMEM f32   (1, H)
    wo_ref   : VMEM f32   (H, 1)      out_proj weight, stored (in, out)
    bo_ref   : VMEM f32   (1, 1)
    out_ref  : VMEM f32   (TB, 1)
    acc_ref  : VMEM f32   (TB, H)     masked-sum accumulator (lives across seq axis)
    """
    TB, TS, H = feat_ref.shape
    s_step = pl.program_id(1)

    @pl.when(s_step == 0)
    def _init():
        acc_ref[...] = jnp.zeros_like(acc_ref)

    start = idx_ref[:, 0:1]                                   # (TB, 1) int32
    end = idx_ref[:, 1:2]                                     # (TB, 1) int32

    # Block-diagonal selection mask so the pooled sum is ONE MXU matmul:
    #   mask[i, b*TS + s] = (b == i) and (start[i] <= s_global < end[i])
    # built without integer div/mod: column j belongs to row i iff
    # i*TS <= j < (i+1)*TS, and its local seq index is j - i*TS.
    col = lax.broadcasted_iota(jnp.int32, (TB, TB * TS), 1)
    row_base = lax.broadcasted_iota(jnp.int32, (TB, TB * TS), 0) * TS
    same_batch = jnp.logical_and(col >= row_base, col < row_base + TS)
    s_global = (col - row_base) + s_step * TS
    in_range = jnp.logical_and(s_global >= start, s_global < end)
    mask = jnp.logical_and(same_batch, in_range).astype(feat_ref.dtype)

    feat2d = feat_ref[...].reshape(TB * TS, H)                # leading-dim collapse only
    acc_ref[...] += jnp.dot(mask, feat2d, preferred_element_type=jnp.float32)

    @pl.when(s_step == pl.num_programs(1) - 1)
    def _finalize():
        # guard end == start against div-by-zero (PyTorch would NaN here)
        cnt = jnp.maximum((end - start).astype(jnp.float32), 1.0)   # (TB, 1)
        x = acc_ref[...] / cnt                                      # mean pooling
        # dropout == identity in eval-mode forward
        h = jnp.tanh(
            jnp.dot(x, wd_ref[...], preferred_element_type=jnp.float32) + bd_ref[...]
        )
        out_ref[...] = (
            jnp.dot(h, wo_ref[...], preferred_element_type=jnp.float32) + bo_ref[...]
        ).astype(out_ref.dtype)


def _pick_seq_tile(S, granule, max_rows):
    """Largest multiple of `granule` that divides S and is <= max_rows (else full S)."""
    if S <= max_rows:
        return S
    best = None
    t = granule
    while t <= max_rows:
        if S % t == 0:
            best = t
        t += granule
    return best if best is not None else S


def regression_head(features, target_idx, wd, bd, wo, bo,
                    *, seq_tile=None, batch_tile=None, feature_dtype=None):
    """MEAN-pooled regression head.

    features  : (B, S, H) float
    target_idx: (2, B) int  -- row 0 = start, row 1 = end (exclusive)
    wd, bd    : dense Linear params stored pre-transposed as (H, H) / (1, H)
    wo, bo    : out_proj Linear params stored pre-transposed as (H, 1) / (1, 1)
    Returns (B, 1) float32.
    """
    if feature_dtype is not None:
        features = features.astype(feature_dtype)
    B, S, H = features.shape
    itemsize = jnp.dtype(features.dtype).itemsize
    sub = 8 * (4 // itemsize)                        # sublane granule: 8 f32 / 16 bf16

    # Batch tile: must be B (full) or a multiple of 8 (sublane constraint on the
    # (TB, 1) output / (TB, 2) index blocks).
    if batch_tile is None:
        batch_tile = 8 if (B % 8 == 0) else B
    if B % batch_tile != 0:
        batch_tile = B
    TB = batch_tile

    # Sequence tile: cap the streamed features block at ~4 MiB so double-buffered
    # pipelining fits comfortably even under v7x's 64 MiB VMEM.
    if seq_tile is None:
        budget_rows = max(sub, (4 << 20) // max(1, TB * H * itemsize))
        seq_tile = _pick_seq_tile(S, sub, budget_rows)
    if S % seq_tile != 0 or (seq_tile != S and seq_tile % sub != 0):
        seq_tile = S
    TS = seq_tile

    idx = jnp.transpose(target_idx).astype(jnp.int32)          # (B, 2)
    grid = (B // TB, S // TS)

    feat_tile_bytes = TB * TS * H * itemsize
    weight_bytes = (H * H + 2 * H + 2) * 4
    vmem_limit = int(min(max(4 * feat_tile_bytes + weight_bytes + (8 << 20), 16 << 20),
                         64 << 20))

    cost = pl.CostEstimate(
        flops=2 * B * S * H + 2 * B * H * H + 2 * B * H,
        transcendentals=B * H,
        bytes_accessed=B * S * H * itemsize + weight_bytes + B * 2 * 4 + B * 4,
    )

    return pl.pallas_call(
        _regression_head_kernel,
        out_shape=jax.ShapeDtypeStruct((B, 1), jnp.float32),
        grid_spec=pltpu.PrefetchScalarGridSpec(
            num_scalar_prefetch=0,
            grid=grid,
            in_specs=[
                pl.BlockSpec((TB, 2), lambda b, s: (b, 0)),          # start/end
                pl.BlockSpec((TB, TS, H), lambda b, s: (b, s, 0)),   # streamed features
                pl.BlockSpec((H, H), lambda b, s: (0, 0)),           # resident weights
                pl.BlockSpec((1, H), lambda b, s: (0, 0)),
                pl.BlockSpec((H, 1), lambda b, s: (0, 0)),
                pl.BlockSpec((1, 1), lambda b, s: (0, 0)),
            ],
            out_specs=pl.BlockSpec((TB, 1), lambda b, s: (b, 0)),
            scratch_shapes=[pltpu.VMEM((TB, H), jnp.float32)],
        ),
        compiler_params=pltpu.CompilerParams(
            dimension_semantics=("parallel", "arbitrary"),
            vmem_limit_bytes=vmem_limit,
        ),
        cost_estimate=cost,
    )(idx, features, wd, bd, wo, bo)


if __name__ == "__main__":
    B, S, H = 2, 16, 32  # small shapes: batch=2, seq=16, hidden=32

    key = jax.random.PRNGKey(0)
    k1, k2, k3, k4, k5 = jax.random.split(key, 5)

    features = jax.random.normal(k1, (B, S, H), dtype=jnp.float32)

    # Deterministic synthetic parameters (stored pre-transposed: (in, out)).
    wd = jax.random.normal(k2, (H, H), dtype=jnp.float32) * 0.05
    bd = jax.random.normal(k3, (1, H), dtype=jnp.float32) * 0.05
    wo = jax.random.normal(k4, (H, 1), dtype=jnp.float32) * 0.05
    bo = jax.random.normal(k5, (1, 1), dtype=jnp.float32) * 0.05

    # target_idx = (start, end) per batch element, like the PyTorch forward.
    start = jnp.array([1, 4], dtype=jnp.int32)
    end = jnp.array([9, 16], dtype=jnp.int32)
    target_idx = jnp.stack([start, end], axis=0)  # (2, B)

    def ref_forward(feats_f32):
        pooled = jnp.stack(
            [jnp.mean(feats_f32[b, int(start[b]):int(end[b]), :], axis=0)
             for b in range(B)]
        )
        return jnp.tanh(pooled @ wd + bd) @ wo + bo

    # --- f32 path: sequence axis tiled (2 grid steps), tight tolerance ---
    out_f32 = regression_head(features, target_idx, wd, bd, wo, bo, seq_tile=8)
    out_f32 = jax.block_until_ready(out_f32)
    ref_f32 = ref_forward(features)
    assert out_f32.shape == (B, 1)
    assert jnp.allclose(out_f32, ref_f32, atol=1e-5, rtol=1e-5), (out_f32, ref_f32)

    # --- bf16-feature streaming path (halves HBM traffic; f32 accumulation) ---
    out_bf16 = regression_head(features, target_idx, wd, bd, wo, bo,
                               feature_dtype=jnp.bfloat16)
    out_bf16 = jax.block_until_ready(out_bf16)
    ref_bf16 = ref_forward(features.astype(jnp.bfloat16).astype(jnp.float32))
    assert jnp.allclose(out_bf16, ref_bf16, atol=1e-3, rtol=1e-3), (out_bf16, ref_bf16)

    print("KERNEL_OK")
</pallas_src>

<mosaic_0001>
module attributes {stable_mosaic.version = 11 : i64} {
  func.func @_regression_head_kernel(%arg0: i32, %arg1: i32, %arg2: memref<2x2xi32, #tpu.memory_space<vmem>>, %arg3: memref<2x8x32xf32, #tpu.memory_space<vmem>>, %arg4: memref<32x32xf32, #tpu.memory_space<vmem>>, %arg5: memref<1x32xf32, #tpu.memory_space<vmem>>, %arg6: memref<32x1xf32, #tpu.memory_space<vmem>>, %arg7: memref<1x1xf32, #tpu.memory_space<vmem>>, %arg8: memref<2x1xf32, #tpu.memory_space<vmem>>, %arg9: memref<2x32xf32, #tpu.memory_space<vmem>>) attributes {dimension_semantics = [#tpu.dimension_semantics<parallel>, #tpu.dimension_semantics<arbitrary>], iteration_bounds = array<i64: 1, 2>, scalar_prefetch = 0 : i64, scratch_operands = 1 : i64, tpu.core_type = #tpu.core_type<tc>, window_params = [{transform_indices = @transform_0, window_bounds = array<i64: 2, 2>}, {transform_indices = @transform_1, window_bounds = array<i64: 2, 8, 32>}, {pipeline_mode = #tpu.pipeline_mode<synchronous>, transform_indices = @transform_2, window_bounds = array<i64: 32, 32>}, {pipeline_mode = #tpu.pipeline_mode<synchronous>, transform_indices = @transform_3, window_bounds = array<i64: 1, 32>}, {pipeline_mode = #tpu.pipeline_mode<synchronous>, transform_indices = @transform_4, window_bounds = array<i64: 32, 1>}, {pipeline_mode = #tpu.pipeline_mode<synchronous>, transform_indices = @transform_5, window_bounds = array<i64: 1, 1>}, {transform_indices = @transform_6, window_bounds = array<i64: 2, 1>}]} {
    %c0_i32 = arith.constant 0 : i32
    %0 = arith.cmpi eq, %arg1, %c0_i32 : i32
    %1 = arith.extui %0 : i1 to i32
    %c0_i32_0 = arith.constant 0 : i32
    %2 = arith.cmpi ne, %1, %c0_i32_0 : i32
    scf.if %2 {
      %cst_13 = arith.constant 0.000000e+00 : f32
      %35 = vector.broadcast %cst_13 : f32 to vector<2x32xf32>
      %c0_14 = arith.constant 0 : index
      %c0_15 = arith.constant 0 : index
      %36 = vector.load %arg9[%c0_14, %c0_15] : memref<2x32xf32, #tpu.memory_space<vmem>>, vector<2x32xf32>
      tpu.vector_store %arg9[%c0_14, %c0_15], %35 {strides = array<i32>} : memref<2x32xf32, #tpu.memory_space<vmem>>, vector<2x32xf32>,
    } else {
    }
    %c0 = arith.constant 0 : index
    %c0_1 = arith.constant 0 : index
    %3 = vector.load %arg2[%c0, %c0_1] : memref<2x2xi32, #tpu.memory_space<vmem>>, vector<2x1xi32>
    %c0_2 = arith.constant 0 : index
    %c1 = arith.constant 1 : index
    %4 = vector.load %arg2[%c0_2, %c1] : memref<2x2xi32, #tpu.memory_space<vmem>>, vector<2x1xi32>
    %5 = tpu.iota {dimensions = array<i32: 1>} : vector<2x16xi32>
    %6 = tpu.iota {dimensions = array<i32: 0>} : vector<2x16xi32>
    %c8_i32 = arith.constant 8 : i32
    %7 = vector.broadcast %c8_i32 : i32 to vector<2x16xi32>
    %8 = arith.muli %6, %7 : vector<2x16xi32>
    %9 = arith.cmpi sge, %5, %8 : vector<2x16xi32>
    %c8_i32_3 = arith.constant 8 : i32
    %10 = vector.broadcast %c8_i32_3 : i32 to vector<2x16xi32>
    %11 = arith.addi %8, %10 : vector<2x16xi32>
    %12 = arith.cmpi slt, %5, %11 : vector<2x16xi32>
    %13 = arith.andi %9, %12 : vector<2x16xi1>
    %14 = arith.subi %5, %8 : vector<2x16xi32>
    %c8_i32_4 = arith.constant 8 : i32
    %15 = arith.muli %arg1, %c8_i32_4 : i32
    %16 = vector.broadcast %15 : i32 to vector<2x16xi32>
    %17 = arith.addi %14, %16 : vector<2x16xi32>
    %18 = vector.broadcast %3 : vector<2x1xi32> to vector<2x16xi32>
    %19 = arith.cmpi sge, %17, %18 : vector<2x16xi32>
    %20 = vector.broadcast %4 : vector<2x1xi32> to vector<2x16xi32>
    %21 = arith.cmpi slt, %17, %20 : vector<2x16xi32>
    %22 = arith.andi %19, %21 : vector<2x16xi1>
    %23 = arith.andi %13, %22 : vector<2x16xi1>
    %24 = arith.extui %23 : vector<2x16xi1> to vector<2x16xi32>
    %25 = arith.sitofp %24 : vector<2x16xi32> to vector<2x16xf32>
    %c0_5 = arith.constant 0 : index
    %c0_6 = arith.constant 0 : index
    %c0_7 = arith.constant 0 : index
    %26 = vector.load %arg3[%c0_5, %c0_6, %c0_7] : memref<2x8x32xf32, #tpu.memory_space<vmem>>, vector<2x8x32xf32>
    %27 = vector.shape_cast %26 : vector<2x8x32xf32> to vector<16x32xf32>
    %c0_8 = arith.constant 0 : index
    %c0_9 = arith.constant 0 : index
    %28 = vector.load %arg9[%c0_8, %c0_9] : memref<2x32xf32, #tpu.memory_space<vmem>>, vector<2x32xf32>
    %cst = arith.constant dense<0.000000e+00> : vector<2x32xf32>
    %29 = tpu.matmul %25, %27, %cst {dimension_numbers = #tpu.dot_dimension_numbers<[1], [0], [0], [1], [0, 0, 1, 1], [], []>} : vector<2x16xf32>, vector<16x32xf32>, vector<2x32xf32> -> vector<2x32xf32>
    %30 = arith.addf %28, %29 : vector<2x32xf32>
    %c0_10 = arith.constant 0 : index
    %c0_11 = arith.constant 0 : index
    %31 = vector.load %arg9[%c0_10, %c0_11] : memref<2x32xf32, #tpu.memory_space<vmem>>, vector<2x32xf32>
    tpu.vector_store %arg9[%c0_10, %c0_11], %30 {strides = array<i32>} : memref<2x32xf32, #tpu.memory_space<vmem>>, vector<2x32xf32>,
    %c1_i32 = arith.constant 1 : i32
    %32 = arith.cmpi eq, %arg1, %c1_i32 : i32
    %33 = arith.extui %32 : i1 to i32
    %c0_i32_12 = arith.constant 0 : i32
    %34 = arith.cmpi ne, %33, %c0_i32_12 : i32
    scf.if %34 {
      %35 = arith.subi %4, %3 : vector<2x1xi32>
      %36 = arith.sitofp %35 : vector<2x1xi32> to vector<2x1xf32>
      %cst_13 = arith.constant 1.000000e+00 : f32
      %37 = vector.broadcast %cst_13 : f32 to vector<2x1xf32>
      %38 = arith.maximumf %36, %37 : vector<2x1xf32>
      %c0_14 = arith.constant 0 : index
      %c0_15 = arith.constant 0 : index
      %39 = vector.load %arg9[%c0_14, %c0_15] : memref<2x32xf32, #tpu.memory_space<vmem>>, vector<2x32xf32>
      %40 = vector.broadcast %38 : vector<2x1xf32> to vector<2x32xf32>
      %41 = arith.divf %39, %40 : vector<2x32xf32>
      %c0_16 = arith.constant 0 : index
      %c0_17 = arith.constant 0 : index
      %42 = vector.load %arg4[%c0_16, %c0_17] : memref<32x32xf32, #tpu.memory_space<vmem>>, vector<32x32xf32>
      %cst_18 = arith.constant dense<0.000000e+00> : vector<2x32xf32>
      %43 = tpu.matmul %41, %42, %cst_18 {dimension_numbers = #tpu.dot_dimension_numbers<[1], [0], [0], [1], [0, 0, 1, 1], [], []>} : vector<2x32xf32>, vector<32x32xf32>, vector<2x32xf32> -> vector<2x32xf32>
      %c0_19 = arith.constant 0 : index
      %c0_20 = arith.constant 0 : index
      %44 = vector.load %arg5[%c0_19, %c0_20] : memref<1x32xf32, #tpu.memory_space<vmem>>, vector<1x32xf32>
      %45 = vector.broadcast %44 : vector<1x32xf32> to vector<2x32xf32>
      %46 = arith.addf %43, %45 : vector<2x32xf32>
      %47 = math.tanh %46 : vector<2x32xf32>
      %c0_21 = arith.constant 0 : index
      %c0_22 = arith.constant 0 : index
      %48 = vector.load %arg6[%c0_21, %c0_22] : memref<32x1xf32, #tpu.memory_space<vmem>>, vector<32x1xf32>
      %cst_23 = arith.constant dense<0.000000e+00> : vector<2x1xf32>
      %49 = tpu.matmul %47, %48, %cst_23 {dimension_numbers = #tpu.dot_dimension_numbers<[1], [0], [0], [1], [0, 0, 1, 1], [], []>} : vector<2x32xf32>, vector<32x1xf32>, vector<2x1xf32> -> vector<2x1xf32>
      %c0_24 = arith.constant 0 : index
      %c0_25 = arith.constant 0 : index
      %50 = vector.load %arg7[%c0_24, %c0_25] : memref<1x1xf32, #tpu.memory_space<vmem>>, vector<1x1xf32>
      %51 = vector.broadcast %50 : vector<1x1xf32> to vector<2x1xf32>
      %52 = arith.addf %49, %51 : vector<2x1xf32>
      %c0_26 = arith.constant 0 : index
      %c0_27 = arith.constant 0 : index
      %53 = vector.load %arg8[%c0_26, %c0_27] : memref<2x1xf32, #tpu.memory_space<vmem>>, vector<2x1xf32>
      tpu.vector_store %arg8[%c0_26, %c0_27], %52 {strides = array<i32>} : memref<2x1xf32, #tpu.memory_space<vmem>>, vector<2x1xf32>,
    } else {
    }
    return
  }
  func.func @transform_0(%arg0: i32, %arg1: i32) -> (i32, i32) {
    %c0_i32 = arith.constant 0 : i32
    %c0_i32_0 = arith.constant 0 : i32
    return %arg0, %c0_i32 : i32, i32
  }
  func.func @transform_1(%arg0: i32, %arg1: i32) -> (i32, i32, i32) {
    %c0_i32 = arith.constant 0 : i32
    %c0_i32_0 = arith.constant 0 : i32
    return %arg0, %arg1, %c0_i32 : i32, i32, i32
  }
  func.func @transform_2(%arg0: i32, %arg1: i32) -> (i32, i32) {
    %c0_i32 = arith.constant 0 : i32
    %c0_i32_0 = arith.constant 0 : i32
    %c0_i32_1 = arith.constant 0 : i32
    return %c0_i32, %c0_i32_0 : i32, i32
  }
  func.func @transform_3(%arg0: i32, %arg1: i32) -> (i32, i32) {
    %c0_i32 = arith.constant 0 : i32
    %c0_i32_0 = arith.constant 0 : i32
    %c0_i32_1 = arith.constant 0 : i32
    return %c0_i32, %c0_i32_0 : i32, i32
  }
  func.func @transform_4(%arg0: i32, %arg1: i32) -> (i32, i32) {
    %c0_i32 = arith.constant 0 : i32
    %c0_i32_0 = arith.constant 0 : i32
    %c0_i32_1 = arith.constant 0 : i32
    return %c0_i32, %c0_i32_0 : i32, i32
  }
  func.func @transform_5(%arg0: i32, %arg1: i32) -> (i32, i32) {
    %c0_i32 = arith.constant 0 : i32
    %c0_i32_0 = arith.constant 0 : i32
    %c0_i32_1 = arith.constant 0 : i32
    return %c0_i32, %c0_i32_0 : i32, i32
  }
  func.func @transform_6(%arg0: i32, %arg1: i32) -> (i32, i32) {
    %c0_i32 = arith.constant 0 : i32
    %c0_i32_0 = arith.constant 0 : i32
    return %arg0, %c0_i32 : i32, i32
  }
}

</mosaic_0001>

<bundles_post_ra>
// kernel: tpu_custom_call.1
= control target key start
LH: loop header
LB: loop body
LE: loop exit
PB: predicated region body
PF: predicated region fallthrough
CT: control target
= control target key end

     0   :  { %s1141_s0 = inlined_call_operand.vmem [shape: s32[2,2], index: 0, kind: input, shape index: {}]   ;;  %s1142_s1 = inlined_call_operand.vmem [shape: f32[2,16,32], index: 1, kind: input, shape index: {}]   ;;  %s1143_s2 = inlined_call_operand.hbm [shape: f32[32,32], index: 2, kind: input, shape index: {}]   ;;  %s1144_s3 = inlined_call_operand.vmem [shape: f32[1,32], index: 3, kind: input, shape index: {}]   ;;  %s1145_s4 = inlined_call_operand.vmem [shape: f32[32,1], index: 4, kind: input, shape index: {}]   ;;  %s1146_s5 = inlined_call_operand.<no memory space> [shape: f32[1,1], index: 5, kind: input, shape index: {}]   ;;  %s1147_s6 = inlined_call_operand.vmem [shape: f32[2,1], index: 6, kind: output, shape index: {}]  }
   0x1   :  { %v11_v0 = vstv %s1146_s5 }
   0x2   :  { %12 = vst [vmem:[#allocation3] sm:$0x1] %v11_v0 }
   0x3   :  { %13 = vsyncpa [#allocation6], 0  ;;  %s1009_s23 = smov 0   ;;  %s1011_s24 = smov 0  }
   0x4   :  { %s1013_s25 = smov 0   ;;  %s1015_s26 = smov 0  }
   0x5   :  { %s1017_s27 = smov 0  }
   0x6 LB: > { %s735_s5 = sadd.s32 4294967295, %s955_s27   ;;  %s28_s28 = sadd.s32 1, %s951_s26  ;;  %s955_s27 = sphi %s1017_s27, %s19_s27   ;;  %s951_s26 = sphi %s1015_s26, %s1161_s26   ;;  %s947_s25 = sphi %s1013_s25, %s1160_s25   ;;  %s943_s24 = sphi %s1011_s24, %s1159_s24   ;;  %s939_s23 = sphi %s1009_s23, %s1158_s23  }
   0x7   : > { %p29_p0 = scmp.ge.s32.totalorder %s28_s28, 2  ;;  %s66_s29 = sadd.s32 1, %s943_s24 }
   0x8   : > { %p73_p1 = scmp.ne.s32.totalorder %s943_s24, %s939_s23  ;;  %p74_p2 = scmp.eq.s32.totalorder %s955_s27, 0 }
   0x9   : > { %s1163_s28 = smov (%p29_p0, %s28_s28), 0  ;;  %p736_p4 = scmp.ge.s32.totalorder %s955_s27, 1 }
   0xa   : > { %p1042_p3 = por %p74_p2, %p73_p1  ;;  %s62_s7 = ssub.s32 %s951_s26, %s1163_s28 }
   0xb   : > { %p200_p5 = scmp.lt.s32.totalorder %s955_s27, 3  ;;  %p64_p6 = scmp.eq.s32.totalorder %s62_s7, 0 }
   0xc   : > { %s1151_s30 = scalar_select %p1042_p3, 1, 0 }
   0xd   : > { %p1050_p7 = pnand %p736_p4, %p200_p5  ;;  %p1054_p8 = scmp.eq.s32.totalorder %s735_s5, 0 }
   0xe   : > { %s1059_s10 = scalar_select %p64_p6, %s943_s24, %s66_s29  }
   0xf   : > { %s1152_s8 = scalar_select %p1050_p7, 1, 0 }
  0x10   : > { %s1153_s9 = scalar_select %p1054_p8, 1, 0 }
  0x11   : > { %p818_p9 = pneg %p1050_p7  ;;  %s957_s11 = smov [#allocation5]  }
  0x12   : > { %s219_s12 = sshll.u32 %s957_s11, 4  ;;  %s885_s16 = scalar_lea.hbm %s1143_s2, 512  ;;  %s220_s12 = int_to_ptr.vmem [resolvable:$true] %s219_s12 }
  0x13   : > { %p1065_p10 = pnand %p1054_p8, %p818_p9  ;;  %p886_p11 = scmp.ne.s32.totalorder %s1143_s2, %s885_s16 }
  0x14   : > { %p892_p1 = scmp.lt.u32.totalorder %s885_s16, %s1143_s2 }
  0x15   : > { %p887_p12 = pneg %p1065_p10 }
  0x17   : > { %p888_p13 = pnand %p887_p12, %p886_p11 }
  0x19   : > { %p889_p0 = pneg %p888_p13 }
  0x1b   : > { %p894_p2 = pnand %p892_p1, %p889_p0 }
  0x1d   : > { %897 = shalt.err (!%p894_p2)
}
  0x1e   : > { %s898_s21 = scalar_lea.vmem %s220_s12, 512  ;;  %p906_p9 = scmp.lt.s32.totalorder %s220_s12, %s220_s12 }
  0x1f   : > { %p899_p4 = scmp.ne.s32.totalorder %s220_s12, %s898_s21  ;;  %p907_p8 = scmp.lt.s32.totalorder %s898_s21, %s898_s21 }
  0x21   : > { %p901_p5 = pnand %p899_p4, %p887_p12  ;;  %p908_p7 = por %p907_p8, %p906_p9 }
  0x23   : > { %p902_p6 = pneg %p901_p5 }
  0x25   : > { %p909_p3 = pnand %p908_p7, %p902_p6 }
  0x27   : > { %912 = shalt.err (!%p909_p3)
}
  0x28   : > { %s958_s22 = smov 128   ;;  %s959_s5 = smov 8  }
  0x29   : > { %821 = dma.hbm_to_vmem [thread:$0]  (!%p1065_p10), %s1143_s2, 512, %s220_s12, [#allocation6], %s958_s22, %s958_s22, %s959_s5  }
  0x2a   : > { %p739_p11 = scmp.ge.s32.totalorder %s955_s27, 2 }
  0x2b   : > { %p1155_p13 = scmp.ne.s32.totalorder (!%p739_p11), %s1151_s30, 0 }
  0x2c   : > { %238 = sbr.rel (%p739_p11) target bundleno = 58 (0x3a), region = 36 }
  0x33   : > { %241 = sbr.rel (!%p1155_p13) target bundleno = 58 (0x3a), region = 40  ;;  %s243_s11 = sand.u32 (%p1155_p13), 1, %s943_s24  }
  0x34   : > { %s741_s14 = sshll.u32 (%p1155_p13), %s951_s26, 3  ;;  %s740_s15 = sshll.u32 (%p1155_p13), %s243_s11, 4 }
  0x35   : > { %s250_s18 = scalar_lea.vmem (%p1155_p13), %s1142_s1, %s741_s14  ;;  %s245_s13 = scalar_lea.vmem (%p1155_p13), [#allocation4], %s740_s15 }
  0x36   : > { %v280_v1 = vld [vmem:[%s250_s18] sm:$0xff] (%p1155_p13)  ;;  %v282_v2 = vld [vmem:[%s250_s18 + $0x10] sm:$0xff] (%p1155_p13) }
  0x37   : > { %281 = vst [vmem:[%s245_s13] sm:$0xff] (%p1155_p13), %v280_v1  ;;  %283 = vst [vmem:[%s245_s13 + $0x8] sm:$0xff] (%p1155_p13), %v282_v2 }
  0x3a PF: > { %p1156_p3 = scmp.ne.s32.totalorder %s1152_s8, 0 }
  0x3b   : > { %s295_s30 = sand.u32 (!%p1156_p3), 1, %s939_s23   ;;  %p1157_p7 = scmp.ne.s32.totalorder (!%p1156_p3), %s1153_s9, 0 }
  0x3c   : > { %292 = sbr.rel (%p1156_p3) target bundleno = 880 (0x370), region = 78  ;;  %s743_s12 = sshll.u32 (!%p1156_p3), %s295_s30, 4 }
  0x3d   : > { %s297_s19 = scalar_lea.vmem (!%p1156_p3), [#allocation4], %s743_s12 }
  0x43   : > { %934 = dma.done.wait (%p1157_p7), [#allocation6], 512  }
  0x44   : > { %936 = vsyncadd (%p1157_p7), [#allocation6], 4294966784  ;;  %p745_p8 = scmp.ne.s32.totalorder %s947_s25, 0 }
  0x45   : > { %vm344_vm0 = vcmask (!%p745_p8), 254976   ;;  %v960_v3 = vmov (!%p745_p8), 0.0  }
  0x46   : > { %343 = sbr.rel (%p745_p8) target bundleno = 77 (0x4d), region = 90  ;;  %345 = vst.msk [vmem:[#allocation2] sm:$0x3] (!%p745_p8), %vm344_vm0, %v960_v3 }
  0x4d PF: > { %v346_v4 = vld [vmem:[%s1141_s0] sm:$0x3]  ;;  %v961_v5 = vmov 0   ;;  %v372_v6 = vld [vmem:[%s297_s19] sm:$0xff]  ;;  %v962_v8 = vmov 1   ;;  %v963_v10 = vmov 0.0|0.0   ;;  %v347_v12 = vlaneseq }
  0x4e   : > { %878 = vset.pattern.permute.xlu0 %v961_v5  ;;  %v373_v7 = vld [vmem:[%s297_s19 + $0x8] sm:$0xff]  ;;  %799 = vmatprep.subr.bf16.mxu0 %v963_v10  ;;  %vm964_vm1 = vmmov 0   ;;  %v965_v11 = vmov 0.0   ;;  %s746_s23 = sshll.u32 %s947_s25, 3  ;;  %vm375_vm8 = vcmask 130048   ;;  %vm450_vm10 = vcmask 254976  }
  0x4f   : > { %361 = vperm.xlu0 %878, %v346_v4   ;;  %v800_v9 = vpack.c.bf16 %v373_v7, %v372_v6  ;;  %774 = vmatprep.mubr.msk.f32.mxu0 %vm964_vm1, %v965_v11  ;;  %v350_v13 = vshrl.u32 %v347_v12, 7  ;;  %v348_v14 = vand.u32 127, %v347_v12  ;;  %v358_v18 = vstv %s746_s23  ;;  %v374_v23 = vld [vmem:[#allocation2] sm:$0x3]  ;;  %p749_p10 = scmp.ne.s32.totalorder %s947_s25, 1 }
  0x50   : > { %s966_s9 = smov (!%p749_p10), 1   ;;  %v967_v27 = vmov (!%p749_p10), 1   ;;  %v469_v32 = vld [vmem:[#allocation5] sm:$0xff] (!%p749_p10)  ;;  %v470_v33 = vld [vmem:[#allocation5 + $0x8] sm:$0xff] (!%p749_p10)  ;;  %v471_v34 = vld [vmem:[#allocation5 + $0x10] sm:$0xff] (!%p749_p10)  ;;  %v968_v35 = vmov (!%p749_p10), 0.0|0.0  }
  0x51   : > { %801 = vmatpush3.bf16.msra.mxu0 %v800_v9  ;;  %v351_v15 = vmul.u32 8, %v350_v13  ;;  %v803_v36 = vpack.c.bf16 (!%p749_p10), %v470_v33, %v469_v32  ;;  %v472_v37 = vld [vmem:[#allocation5 + $0x18] sm:$0xff] (!%p749_p10)  ;;  %vm969_vm11 = vmmov (!%p749_p10), 0   ;;  %v970_v38 = vmov (!%p749_p10), 0.0   ;;  %808 = vmatprep.subr.bf16.mxu1 (!%p749_p10), %v968_v35  ;;  %v556_v45 = vld [vmem:[%s1145_s4 + $0x8] sm:$0xff] (!%p749_p10)  ;;  %v557_v46 = vld [vmem:[%s1145_s4 + $0x10] sm:$0xff] (!%p749_p10) }
  0x52   : > { %802 = vmatprep.subr.bf16.mxu0 (!%p749_p10), %v968_v35  ;;  %796 = vmatprep.mubr.msk.f32.mxu1 (!%p749_p10), %vm969_vm11, %v970_v38  ;;  %v806_v39 = vpack.c.bf16 (!%p749_p10), %v472_v37, %v471_v34  ;;  %vm480_vm12 = vcmask (!%p749_p10), 261120   ;;  %v555_v44 = vld [vmem:[%s1145_s4] sm:$0xff] (!%p749_p10)  ;;  %v558_v48 = vld [vmem:[%s1145_s4 + $0x18] sm:$0xff] (!%p749_p10)  ;;  %vm639_vm13 = vcmask (!%p749_p10), 1024  }
  0x53   : > { %879 = vset.pattern.permute.xlu0 %v962_v8  ;;  %v356_v16 = vsub.s32 %v348_v14, %v351_v15  ;;  %v353_v17 = vadd.s32 8, %v351_v15  ;;  %vm352_vm2 = vcmp.ge.s32.totalorder %v348_v14, %v351_v15  ;;  %v809_v47 = vpack.c.bf16 (!%p749_p10), %v556_v45, %v555_v44  ;;  %v750_v50 = vld [vmem:[%s1144_s3] ss:$0 sm:$0xff] (!%p749_p10)  ;;  %v752_v55 = vld [vmem:[#allocation3] ss:$0 sm:$0xff] (!%p749_p10) }
  0x54   : > { %365 = vperm.xlu0 %879, %v346_v4   ;;  %v812_v49 = vpack.c.bf16 (!%p749_p10), %v558_v48, %v557_v46 }
  0x55   : > { %v359_v20 = vadd.s32 %v358_v18, %v356_v16  ;;  %vm354_vm3 = vcmp.lt.s32.totalorder %v348_v14, %v353_v17  ;;  %810 = vmatpush3.bf16.msra.mxu1 (!%p749_p10), %v809_v47 }
  0x56   : > { %vm355_vm4 = vmand %vm352_vm2, %vm354_vm3  ;;  %811 = vmatprep.subr.bf16.mxu1 (!%p749_p10), %v968_v35 }
  0x58   : > { %456 = vrot.lane.b32.xlu0 (!%p749_p10), %v346_v4, %s966_s9 }
  0x59   : > { %880 = vset.pattern.permute.xlu0 (!%p749_p10), %v967_v27  ;;  %813 = vmatpush3.bf16.msra.mxu1 (!%p749_p10), %v812_v49 }
  0xce   : > { %v362_v19 = vpop.permute.xlu0 %361 }
  0xcf   : > { %vm363_vm5 = vcmp.ge.s32.totalorder %v359_v20, %v362_v19 }
  0xd3   : > { %v366_v21 = vpop.permute.xlu0 %365 }
  0xd4   : > { %vm367_vm6 = vcmp.lt.s32.totalorder %v359_v20, %v366_v21 }
  0xd5   : > { %vm368_vm7 = vmand %vm363_vm5, %vm367_vm6 }
  0xd6   : > { %vm369_vm9 = vmand %vm355_vm4, %vm368_vm7 }
  0xd7   : > { %v747_v22 = vsel %vm369_vm9, 1.0, %v965_v11  ;;  %v457_v28 = vpop.permute.xlu0 (!%p749_p10), %456 }
  0xd8   : > { %775 = vmatmul.mubr.msk.f32.vlgmr.msra.gmra.mrb[0].mxu0 %vm375_vm8, %v747_v22  ;;  %v458_v29 = vsub.s32 (!%p749_p10), %v346_v4, %v457_v28 }
  0xd9   : > { %785 = vmatprep.mubr.msk.f32.mxu0 (!%p749_p10), %vm969_vm11, %v970_v38  ;;  %804 = vmatpush3.bf16.msra.mxu0 (!%p749_p10), %v803_v36 }
  0xda   : > { %v459_v30 = vcvt.s32.f32 (!%p749_p10), %v458_v29  ;;  %805 = vmatprep.subr.bf16.mxu0 (!%p749_p10), %v968_v35 }
  0xdc   : > { %v460_v31 = vmax.f32 (!%p749_p10), %v459_v30, 1.0 }
  0xdd   : > { %807 = vmatpush3.bf16.msra.mxu0 (!%p749_p10), %v806_v39 }
  0xde   : > { %464 = vperm.xlu0 (!%p749_p10), %880, %v460_v31  }
 0x15d   : > { %v465_v40 = vpop.permute.xlu0 (!%p749_p10), %464 }
 0x15e   : > { %881 = vrcp.f32 (!%p749_p10), %v465_v40 }
 0x168   : > { %v882_v42 = vpop.eup (!%p749_p10), %881 }
 0x1a8   : > { %455 = sbr.rel (%p749_p10) target bundleno = 880 (0x370), region = 94 }
 0x1ab   : > { %v445_v24 = vpop.f32.mrb[0].mxu0 }
 0x1ac   : > { %v449_v25 = vadd.f32 %v445_v24, %v374_v23  ;;  %v776_v26 = vpop.f32.mrb[1].mxu0 }
 0x1ae   : > { %451 = vst.msk [vmem:[#allocation2] sm:$0x3] %vm450_vm10, %v449_v25 }
 0x1b5   : > { %v461_v41 = vld [vmem:[#allocation2] sm:$0x3] }
 0x1b6   : > { %v468_v43 = vmul.f32 %v882_v42, %v461_v41 }
 0x1b8   : > { %786 = vmatmul.mubr.msk.f32.vlgmr.msra.gmra.mrb[0].mxu0 %vm480_vm12, %v468_v43 }
 0x28b   : > { %v550_v51 = vpop.f32.mrb[0].mxu0 }
 0x28c   : > { %v551_v52 = vadd.f32 %v750_v50, %v550_v51  ;;  %v787_v53 = vpop.f32.mrb[1].mxu0 }
 0x28e   : > { %883 = vtanh.f32 %v551_v52 }
 0x298   : > { %v884_v54 = vpop.eup %883 }
 0x299   : > { %797 = vmatmul.mubr.msk.f32.vlgmr.msra.gmra.mrb[0].mxu1 %vm480_vm12, %v884_v54 }
 0x36c   : > { %v635_v56 = vpop.f32.mrb[0].mxu1 }
 0x36d   : > { %v636_v57 = vadd.f32 %v752_v55, %v635_v56  ;;  %v798_v58 = vpop.f32.mrb[1].mxu1 }
 0x36f   : > { %640 = vst.msk [vmem:[%s1147_s6] sm:$0x3] %vm639_vm13, %v636_v57 }
 0x370 PF: > { %s19_s27 = sadd.s32 1, %s955_s27   ;;  %s1158_s23 = smov %s943_s24 }
 0x371   : > { %p16_p12 = scmp.ge.s32.totalorder %s19_s27, 4   ;;  %s1159_s24 = smov %s1059_s10 }
 0x372   : > { %s1160_s25 = smov %s951_s26  ;;  %s1161_s26 = smov %s1163_s28 }
 0x373   :  { %18 = sbr.rel (!%p16_p12) target bundleno = 6 (0x6), region = 133 }
 0x37a   :  { %660 = vsyncpa [#allocation6], 1 }
 0x37b   :  { %662 = vsyncpa [#allocation6 + $0x1], 1 }

</bundles_post_ra>
